<compile_context>
chip_gen: v6e
topology: v6e:2x2x1
jax: 0.10.0
libtpu: 0.0.40
codegen_flags: <defaults>
</compile_context>

<pallas_src>
import jax
import jax.numpy as jnp
from jax.experimental import pallas as pl
from jax.experimental.pallas import tpu as pltpu


def _round_up(x, m):
    return (x + m - 1) // m * m


def _cdiv(a, b):
    return (a + b - 1) // b


# Sublane packing requirement per element size (f32 -> 8, bf16 -> 16, int8 -> 32).
_SUBLANE_PACK = {4: 8, 2: 16, 1: 32}


def dice_loss(pred, target, *, max_cols_per_chunk=8192, max_rows_per_block=256):
    """Pallas implementation of DiceLoss.forward(pred, target) (NCHW inputs)."""
    assert pred.shape == target.shape
    N, C, H, W = pred.shape
    R = N * C
    S = H * W

    # Lane-dense layout: rows = (n, c), cols = flattened spatial (no copy).
    p2 = pred.reshape(R, S)
    t2 = target.reshape(R, S)

    row_mult = max(_SUBLANE_PACK.get(p2.dtype.itemsize, 8),
                   _SUBLANE_PACK.get(t2.dtype.itemsize, 8))

    # --- Row blocking (sublane axis) -------------------------------------
    # Balance blocks instead of padding to the cap, and prefer >= 2 blocks so
    # both v7x TensorCores are fed via the "parallel" grid axis.  Partial
    # boundary blocks are DMA-clipped by Pallas, so they cost no HBM traffic.
    nblk = _cdiv(R, max_rows_per_block)
    if R >= 2 * row_mult:
        nblk = max(nblk, 2)
    TR = _round_up(_cdiv(R, nblk), row_mult)
    n_row_blocks = _cdiv(R, TR)

    # --- Column chunking (lane axis) --------------------------------------
    # Multiples of 128, balanced across chunks; the ragged tail (< 128*chunks
    # lanes) is masked in-kernel instead of materializing a padded copy.
    S128 = _round_up(S, 128)
    n_chunks = _cdiv(S128, min(S128, max_cols_per_chunk))
    TS = _round_up(_cdiv(S128, n_chunks), 128)
    n_chunks = _cdiv(S, TS)

    n_groups = TS // 128
    needs_col_mask = (S % TS) != 0

    def kernel(p_ref, t_ref, out_ref, inter_ref, psq_ref, tsq_ref):
        chunk = pl.program_id(1)

        @pl.when(chunk == 0)
        def _():
            inter_ref[...] = jnp.zeros_like(inter_ref)
            psq_ref[...] = jnp.zeros_like(psq_ref)
            tsq_ref[...] = jnp.zeros_like(tsq_ref)

        if needs_col_mask:
            lane = jax.lax.broadcasted_iota(jnp.int32, (TR, 128), 1)
            col0 = chunk * TS

        # Accumulate 128-lane column groups into (TR, 128) f32 accumulators:
        # pure VPU work per chunk, no cross-lane reduce until the last chunk.
        for g in range(n_groups):
            sl = pl.ds(g * 128, 128)
            p = p_ref[:, sl].astype(jnp.float32)
            t = t_ref[:, sl].astype(jnp.float32)
            if needs_col_mask:
                valid = (col0 + g * 128 + lane) < S
                p = jnp.where(valid, p, 0.0)
                t = jnp.where(valid, t, 0.0)
            inter_ref[...] += p * t
            psq_ref[...] += p * p
            tsq_ref[...] += t * t

        @pl.when(chunk == pl.num_programs(1) - 1)
        def _():
            smooth = jnp.float32(1.0)
            inter = jnp.sum(inter_ref[...], axis=-1, keepdims=True)
            den = (jnp.sum(psq_ref[...], axis=-1, keepdims=True)
                   + jnp.sum(tsq_ref[...], axis=-1, keepdims=True) + smooth)
            out_ref[...] = (2.0 * inter / den).astype(out_ref.dtype)

    # --- VMEM budget derived from the chosen tiles ------------------------
    in_tile_bytes = 2 * TR * TS * (p2.dtype.itemsize + t2.dtype.itemsize)  # 2x buffered
    acc_bytes = 3 * TR * 128 * 4
    out_bytes = 2 * TR * 4
    vmem_limit = min(64 * 1024 * 1024,
                     max(32 * 1024 * 1024,
                         in_tile_bytes + acc_bytes + out_bytes + 8 * 1024 * 1024))

    bytes_in = R * S * (p2.dtype.itemsize + t2.dtype.itemsize)
    cost = pl.CostEstimate(
        flops=6 * R * S,          # mul + add for each of the 3 sums
        transcendentals=0,
        bytes_accessed=bytes_in + R * 4,
    )

    per_row = pl.pallas_call(
        kernel,
        out_shape=jax.ShapeDtypeStruct((R, 1), jnp.float32),
        grid_spec=pltpu.PrefetchScalarGridSpec(
            num_scalar_prefetch=0,
            grid=(n_row_blocks, n_chunks),
            in_specs=[
                pl.BlockSpec((TR, TS), lambda r, s: (r, s)),
                pl.BlockSpec((TR, TS), lambda r, s: (r, s)),
            ],
            # Per-row-block output slab, resident across the chunk axis and
            # written only on the last chunk; OOB rows are clipped by Pallas.
            out_specs=pl.BlockSpec((TR, 1), lambda r, s: (r, 0)),
            scratch_shapes=[
                pltpu.VMEM((TR, 128), jnp.float32),  # sum(p*t) partials
                pltpu.VMEM((TR, 128), jnp.float32),  # sum(p^2) partials
                pltpu.VMEM((TR, 128), jnp.float32),  # sum(t^2) partials
            ],
        ),
        compiler_params=pltpu.CompilerParams(
            dimension_semantics=("parallel", "arbitrary"),
            vmem_limit_bytes=int(vmem_limit),
        ),
        cost_estimate=cost,
    )(p2, t2)

    # Glue: dice[n] = (1/C) * sum_c term[n, c]; loss = clamp(mean(1 - dice), 0, 1)
    term = per_row[:, 0].reshape(N, C)
    dice = jnp.sum(term, axis=1) / jnp.float32(C)
    return jnp.clip(jnp.mean(1.0 - dice), 0.0, 1.0)


def dice_loss_ref(pred, target):
    """Pure-JAX reference matching the PyTorch module semantics."""
    smooth = 1.0
    pred = pred.astype(jnp.float32)
    target = target.astype(jnp.float32)
    inter = jnp.sum(pred * target, axis=(2, 3))
    p_sq = jnp.sum(pred * pred, axis=(2, 3))
    t_sq = jnp.sum(target * target, axis=(2, 3))
    dice = jnp.sum(2.0 * inter / (p_sq + t_sq + smooth), axis=1) / pred.shape[1]
    return jnp.clip(jnp.mean(1.0 - dice), 0.0, 1.0)


if __name__ == "__main__":
    # DiceLoss has no learnable parameters, so nothing to initialize.
    key = jax.random.PRNGKey(0)
    k1, k2 = jax.random.split(key)

    N, C, H, W = 2, 4, 16, 16
    pred = jax.nn.sigmoid(jax.random.normal(k1, (N, C, H, W), dtype=jnp.float32))
    target = (jax.random.uniform(k2, (N, C, H, W)) > 0.5).astype(jnp.float32)

    loss = dice_loss(pred, target)
    jax.block_until_ready(loss)

    ref = dice_loss_ref(pred, target)
    assert jnp.allclose(loss, ref, atol=1e-5, rtol=1e-5), (loss, ref)

    print("KERNEL_OK")
</pallas_src>

<mosaic_0001>
module attributes {stable_mosaic.version = 11 : i64} {
  func.func @kernel(%arg0: i32, %arg1: i32, %arg2: memref<8x256xf32, #tpu.memory_space<vmem>>, %arg3: memref<8x256xf32, #tpu.memory_space<vmem>>, %arg4: memref<8x1xf32, #tpu.memory_space<vmem>>, %arg5: memref<8x128xf32, #tpu.memory_space<vmem>>, %arg6: memref<8x128xf32, #tpu.memory_space<vmem>>, %arg7: memref<8x128xf32, #tpu.memory_space<vmem>>) attributes {dimension_semantics = [#tpu.dimension_semantics<parallel>, #tpu.dimension_semantics<arbitrary>], iteration_bounds = array<i64: 1, 1>, scalar_prefetch = 0 : i64, scratch_operands = 3 : i64, tpu.core_type = #tpu.core_type<tc>, window_params = [{transform_indices = @transform_0, window_bounds = array<i64: 8, 256>}, {transform_indices = @transform_1, window_bounds = array<i64: 8, 256>}, {transform_indices = @transform_2, window_bounds = array<i64: 8, 1>}]} {
    %c0_i32 = arith.constant 0 : i32
    %0 = arith.cmpi eq, %arg1, %c0_i32 : i32
    %1 = arith.extui %0 : i1 to i32
    %c0_i32_0 = arith.constant 0 : i32
    %2 = arith.cmpi ne, %1, %c0_i32_0 : i32
    scf.if %2 {
      %cst = arith.constant 0.000000e+00 : f32
      %34 = vector.broadcast %cst : f32 to vector<8x128xf32>
      %c0_33 = arith.constant 0 : index
      %c0_34 = arith.constant 0 : index
      %35 = vector.load %arg5[%c0_33, %c0_34] : memref<8x128xf32, #tpu.memory_space<vmem>>, vector<8x128xf32>
      tpu.vector_store %arg5[%c0_33, %c0_34], %34 {strides = array<i32>} : memref<8x128xf32, #tpu.memory_space<vmem>>, vector<8x128xf32>,
      %cst_35 = arith.constant 0.000000e+00 : f32
      %36 = vector.broadcast %cst_35 : f32 to vector<8x128xf32>
      %c0_36 = arith.constant 0 : index
      %c0_37 = arith.constant 0 : index
      %37 = vector.load %arg6[%c0_36, %c0_37] : memref<8x128xf32, #tpu.memory_space<vmem>>, vector<8x128xf32>
      tpu.vector_store %arg6[%c0_36, %c0_37], %36 {strides = array<i32>} : memref<8x128xf32, #tpu.memory_space<vmem>>, vector<8x128xf32>,
      %cst_38 = arith.constant 0.000000e+00 : f32
      %38 = vector.broadcast %cst_38 : f32 to vector<8x128xf32>
      %c0_39 = arith.constant 0 : index
      %c0_40 = arith.constant 0 : index
      %39 = vector.load %arg7[%c0_39, %c0_40] : memref<8x128xf32, #tpu.memory_space<vmem>>, vector<8x128xf32>
      tpu.vector_store %arg7[%c0_39, %c0_40], %38 {strides = array<i32>} : memref<8x128xf32, #tpu.memory_space<vmem>>, vector<8x128xf32>,
    } else {
    }
    %c0 = arith.constant 0 : index
    %c0_1 = arith.constant 0 : index
    %3 = vector.load %arg2[%c0, %c0_1] : memref<8x256xf32, #tpu.memory_space<vmem>>, vector<8x128xf32>
    %c0_2 = arith.constant 0 : index
    %c0_3 = arith.constant 0 : index
    %4 = vector.load %arg3[%c0_2, %c0_3] : memref<8x256xf32, #tpu.memory_space<vmem>>, vector<8x128xf32>
    %c0_4 = arith.constant 0 : index
    %c0_5 = arith.constant 0 : index
    %5 = vector.load %arg5[%c0_4, %c0_5] : memref<8x128xf32, #tpu.memory_space<vmem>>, vector<8x128xf32>
    %6 = arith.mulf %3, %4 : vector<8x128xf32>
    %7 = arith.addf %5, %6 : vector<8x128xf32>
    %c0_6 = arith.constant 0 : index
    %c0_7 = arith.constant 0 : index
    %8 = vector.load %arg5[%c0_6, %c0_7] : memref<8x128xf32, #tpu.memory_space<vmem>>, vector<8x128xf32>
    tpu.vector_store %arg5[%c0_6, %c0_7], %7 {strides = array<i32>} : memref<8x128xf32, #tpu.memory_space<vmem>>, vector<8x128xf32>,
    %c0_8 = arith.constant 0 : index
    %c0_9 = arith.constant 0 : index
    %9 = vector.load %arg6[%c0_8, %c0_9] : memref<8x128xf32, #tpu.memory_space<vmem>>, vector<8x128xf32>
    %10 = arith.mulf %3, %3 : vector<8x128xf32>
    %11 = arith.addf %9, %10 : vector<8x128xf32>
    %c0_10 = arith.constant 0 : index
    %c0_11 = arith.constant 0 : index
    %12 = vector.load %arg6[%c0_10, %c0_11] : memref<8x128xf32, #tpu.memory_space<vmem>>, vector<8x128xf32>
    tpu.vector_store %arg6[%c0_10, %c0_11], %11 {strides = array<i32>} : memref<8x128xf32, #tpu.memory_space<vmem>>, vector<8x128xf32>,
    %c0_12 = arith.constant 0 : index
    %c0_13 = arith.constant 0 : index
    %13 = vector.load %arg7[%c0_12, %c0_13] : memref<8x128xf32, #tpu.memory_space<vmem>>, vector<8x128xf32>
    %14 = arith.mulf %4, %4 : vector<8x128xf32>
    %15 = arith.addf %13, %14 : vector<8x128xf32>
    %c0_14 = arith.constant 0 : index
    %c0_15 = arith.constant 0 : index
    %16 = vector.load %arg7[%c0_14, %c0_15] : memref<8x128xf32, #tpu.memory_space<vmem>>, vector<8x128xf32>
    tpu.vector_store %arg7[%c0_14, %c0_15], %15 {strides = array<i32>} : memref<8x128xf32, #tpu.memory_space<vmem>>, vector<8x128xf32>,
    %c0_16 = arith.constant 0 : index
    %c128 = arith.constant 128 : index
    %17 = vector.load %arg2[%c0_16, %c128] : memref<8x256xf32, #tpu.memory_space<vmem>>, vector<8x128xf32>
    %c0_17 = arith.constant 0 : index
    %c128_18 = arith.constant 128 : index
    %18 = vector.load %arg3[%c0_17, %c128_18] : memref<8x256xf32, #tpu.memory_space<vmem>>, vector<8x128xf32>
    %c0_19 = arith.constant 0 : index
    %c0_20 = arith.constant 0 : index
    %19 = vector.load %arg5[%c0_19, %c0_20] : memref<8x128xf32, #tpu.memory_space<vmem>>, vector<8x128xf32>
    %20 = arith.mulf %17, %18 : vector<8x128xf32>
    %21 = arith.addf %19, %20 : vector<8x128xf32>
    %c0_21 = arith.constant 0 : index
    %c0_22 = arith.constant 0 : index
    %22 = vector.load %arg5[%c0_21, %c0_22] : memref<8x128xf32, #tpu.memory_space<vmem>>, vector<8x128xf32>
    tpu.vector_store %arg5[%c0_21, %c0_22], %21 {strides = array<i32>} : memref<8x128xf32, #tpu.memory_space<vmem>>, vector<8x128xf32>,
    %c0_23 = arith.constant 0 : index
    %c0_24 = arith.constant 0 : index
    %23 = vector.load %arg6[%c0_23, %c0_24] : memref<8x128xf32, #tpu.memory_space<vmem>>, vector<8x128xf32>
    %24 = arith.mulf %17, %17 : vector<8x128xf32>
    %25 = arith.addf %23, %24 : vector<8x128xf32>
    %c0_25 = arith.constant 0 : index
    %c0_26 = arith.constant 0 : index
    %26 = vector.load %arg6[%c0_25, %c0_26] : memref<8x128xf32, #tpu.memory_space<vmem>>, vector<8x128xf32>
    tpu.vector_store %arg6[%c0_25, %c0_26], %25 {strides = array<i32>} : memref<8x128xf32, #tpu.memory_space<vmem>>, vector<8x128xf32>,
    %c0_27 = arith.constant 0 : index
    %c0_28 = arith.constant 0 : index
    %27 = vector.load %arg7[%c0_27, %c0_28] : memref<8x128xf32, #tpu.memory_space<vmem>>, vector<8x128xf32>
    %28 = arith.mulf %18, %18 : vector<8x128xf32>
    %29 = arith.addf %27, %28 : vector<8x128xf32>
    %c0_29 = arith.constant 0 : index
    %c0_30 = arith.constant 0 : index
    %30 = vector.load %arg7[%c0_29, %c0_30] : memref<8x128xf32, #tpu.memory_space<vmem>>, vector<8x128xf32>
    tpu.vector_store %arg7[%c0_29, %c0_30], %29 {strides = array<i32>} : memref<8x128xf32, #tpu.memory_space<vmem>>, vector<8x128xf32>,
    %c0_i32_31 = arith.constant 0 : i32
    %31 = arith.cmpi eq, %arg1, %c0_i32_31 : i32
    %32 = arith.extui %31 : i1 to i32
    %c0_i32_32 = arith.constant 0 : i32
    %33 = arith.cmpi ne, %32, %c0_i32_32 : i32
    scf.if %33 {
      %c0_33 = arith.constant 0 : index
      %c0_34 = arith.constant 0 : index
      %34 = vector.load %arg5[%c0_33, %c0_34] : memref<8x128xf32, #tpu.memory_space<vmem>>, vector<8x128xf32>
      %cst = arith.constant dense<0.000000e+00> : vector<8xf32>
      %35 = vector.multi_reduction <add>, %34, %cst [1] : vector<8x128xf32> to vector<8xf32>
      %36 = vector.shape_cast %35 : vector<8xf32> to vector<8x1xf32>
      %c0_35 = arith.constant 0 : index
      %c0_36 = arith.constant 0 : index
      %37 = vector.load %arg6[%c0_35, %c0_36] : memref<8x128xf32, #tpu.memory_space<vmem>>, vector<8x128xf32>
      %cst_37 = arith.constant dense<0.000000e+00> : vector<8xf32>
      %38 = vector.multi_reduction <add>, %37, %cst_37 [1] : vector<8x128xf32> to vector<8xf32>
      %39 = vector.shape_cast %38 : vector<8xf32> to vector<8x1xf32>
      %c0_38 = arith.constant 0 : index
      %c0_39 = arith.constant 0 : index
      %40 = vector.load %arg7[%c0_38, %c0_39] : memref<8x128xf32, #tpu.memory_space<vmem>>, vector<8x128xf32>
      %cst_40 = arith.constant dense<0.000000e+00> : vector<8xf32>
      %41 = vector.multi_reduction <add>, %40, %cst_40 [1] : vector<8x128xf32> to vector<8xf32>
      %42 = vector.shape_cast %41 : vector<8xf32> to vector<8x1xf32>
      %43 = arith.addf %39, %42 : vector<8x1xf32>
      %cst_41 = arith.constant 1.000000e+00 : f32
      %44 = vector.broadcast %cst_41 : f32 to vector<8x1xf32>
      %45 = arith.addf %43, %44 : vector<8x1xf32>
      %cst_42 = arith.constant 2.000000e+00 : f32
      %46 = vector.broadcast %cst_42 : f32 to vector<8x1xf32>
      %47 = arith.mulf %46, %36 : vector<8x1xf32>
      %48 = arith.divf %47, %45 : vector<8x1xf32>
      %c0_43 = arith.constant 0 : index
      %c0_44 = arith.constant 0 : index
      %49 = vector.load %arg4[%c0_43, %c0_44] : memref<8x1xf32, #tpu.memory_space<vmem>>, vector<8x1xf32>
      tpu.vector_store %arg4[%c0_43, %c0_44], %48 {strides = array<i32>} : memref<8x1xf32, #tpu.memory_space<vmem>>, vector<8x1xf32>,
    } else {
    }
    return
  }
  func.func @transform_0(%arg0: i32, %arg1: i32) -> (i32, i32) {
    %c0_i32 = arith.constant 0 : i32
    return %arg0, %arg1 : i32, i32
  }
  func.func @transform_1(%arg0: i32, %arg1: i32) -> (i32, i32) {
    %c0_i32 = arith.constant 0 : i32
    return %arg0, %arg1 : i32, i32
  }
  func.func @transform_2(%arg0: i32, %arg1: i32) -> (i32, i32) {
    %c0_i32 = arith.constant 0 : i32
    %c0_i32_0 = arith.constant 0 : i32
    return %arg0, %c0_i32 : i32, i32
  }
}

</mosaic_0001>

<bundles_post_ra>
// kernel: tpu_custom_call.1
= control target key start
LH: loop header
LB: loop body
LE: loop exit
PB: predicated region body
PF: predicated region fallthrough
CT: control target
= control target key end

     0   :  { %7 = vsyncpa [#allocation6], 0  ;;  %s169_s0 = inlined_call_operand.hbm [shape: f32[8,256], index: 0, kind: input, shape index: {}]   ;;  %s170_s1 = inlined_call_operand.hbm [shape: f32[8,256], index: 1, kind: input, shape index: {}]   ;;  %s171_s2 = inlined_call_operand.vmem [shape: f32[8,1], index: 2, kind: output, shape index: {}]  }
   0x1   :  { %8 = vsyncpa [#allocation8], 0  ;;  %s143_s9 = smov [#allocation5]   ;;  %s144_s11 = smov [#allocation7]  }
   0x2   :  { %s15_s10 = sshll.u32 %s143_s9, 4  ;;  %s25_s12 = sshll.u32 %s144_s11, 4  ;;  %s16_s10 = int_to_ptr.vmem [resolvable:$true] %s15_s10  ;;  %s26_s12 = int_to_ptr.vmem [resolvable:$true] %s25_s12 }
   0x3   :  { %s107_s13 = scalar_lea.vmem %s16_s10, 256  ;;  %p112_p1 = scmp.lt.s32.totalorder %s16_s10, %s16_s10 }
   0x4   :  { %p108_p0 = scmp.ne.s32.totalorder %s16_s10, %s107_s13  ;;  %p113_p2 = scmp.lt.s32.totalorder %s107_s13, %s107_s13 }
   0x6   :  { %p114_p3 = por %p113_p2, %p112_p1 }
   0x8   :  { %p115_p4 = pnand %p114_p3, %p108_p0 }
   0xa   :  { %118 = shalt.err (!%p115_p4)
}
   0xb   :  { %18 = dma.hbm_to_vmem [thread:$0]  %s169_s0, 256, %s16_s10, [#allocation6]  }
   0xc   :  { %s127_s16 = scalar_lea.vmem %s26_s12, 256  ;;  %p132_p6 = scmp.lt.s32.totalorder %s26_s12, %s26_s12 }
   0xd   :  { %p128_p5 = scmp.ne.s32.totalorder %s26_s12, %s127_s16  ;;  %p133_p7 = scmp.lt.s32.totalorder %s127_s16, %s127_s16 }
   0xf   :  { %p134_p8 = por %p133_p7, %p132_p6 }
  0x11   :  { %p135_p9 = pnand %p134_p8, %p128_p5 }
  0x13   :  { %138 = shalt.err (!%p135_p9)
}
  0x14   :  { %28 = dma.hbm_to_vmem [thread:$0]  %s170_s1, 256, %s26_s12, [#allocation8]  }
  0x15   :  { %139 = dma.done.wait [#allocation6], 256  }
  0x16   :  { %140 = vsyncadd [#allocation6], 4294967040 }
  0x17   :  { %141 = dma.done.wait [#allocation8], 256  }
  0x18   :  { %142 = vsyncadd [#allocation8], 4294967040  ;;  %v42_v0 = vld [vmem:[#allocation5] sm:$0xff]  ;;  %v56_v1 = vld [vmem:[#allocation5 + $0x8] sm:$0xff]  ;;  %vm87_vm0 = vcmask 7168  }
  0x19   :  { %v43_v2 = vld [vmem:[#allocation7] sm:$0xff]  ;;  %v49_v3 = vmul.f32 %v42_v0, %v42_v0  ;;  %v63_v4 = vmul.f32 %v56_v1, %v56_v1  ;;  %v57_v6 = vld [vmem:[#allocation7 + $0x8] sm:$0xff] }
  0x1a   :  { %v53_v5 = vmul.f32 %v43_v2, %v43_v2  ;;  %v45_v7 = vmul.f32 %v43_v2, %v42_v0  ;;  %v67_v8 = vmul.f32 %v57_v6, %v57_v6  ;;  %v59_v9 = vmul.f32 %v57_v6, %v56_v1 }
  0x1b   :  { %v64_v10 = vadd.f32 %v63_v4, %v49_v3 }
  0x1c   :  { %v60_v11 = vadd.f32 %v59_v9, %v45_v7  ;;  %v68_v12 = vadd.f32 %v67_v8, %v53_v5 }
  0x1d   :  { %77 = vadd.xlane.f32.xlu0 %v64_v10 }
  0x1e   :  { %74 = vadd.xlane.f32.xlu1 %v60_v11 }
  0x21   :  { %80 = vadd.xlane.f32.xlu0 %v68_v12 }
  0xa6   :  { %v78_v13 = vpop.xlane.xlu0 %77 }
  0xa7   :  { %v75_v17 = vpop.xlane.xlu1 %74 }
  0xa8   :  { %v84_v18 = vmul.f32 2.0, %v75_v17 }
  0xaa   :  { %v81_v14 = vpop.xlane.xlu0 %80 }
  0xab   :  { %v82_v15 = vadd.f32 %v81_v14, %v78_v13 }
  0xad   :  { %v83_v16 = vadd.f32 1.0, %v82_v15 }
  0xaf   :  { %97 = vrcp.f32 %v83_v16 }
  0xbc   :  { %v98_v19 = vpop.eup %97 }
  0xbd   :  { %v86_v20 = vmul.f32 %v98_v19, %v84_v18 }
  0xbf   :  { %88 = vst.msk [vmem:[%s171_s2] sm:$0xff] %vm87_vm0, %v86_v20 }
  0xc0   :  { %93 = vsyncpa [#allocation6], 1 }
  0xc1   :  { %94 = vsyncpa [#allocation8], 1 }

</bundles_post_ra>
